<compile_context>
chip_gen: v7x
topology: tpu7x:2x2x1
jax: 0.10.0
libtpu: 0.0.40
codegen_flags: <defaults>
</compile_context>

<pallas_src>
import functools

import jax
import jax.numpy as jnp
from jax.experimental import pallas as pl
from jax.experimental.pallas import tpu as pltpu


def _mh_rmsnorm_kernel(*refs, scale, eps, folded):
    if folded:
        x_ref, g_ref, seg_ref, o_ref = refs
    else:
        x_ref, g_ref, o_ref = refs

    x = x_ref[...].astype(jnp.float32)            # (TS, Df)
    g = g_ref[...].astype(jnp.float32) * scale    # (1, Df)  sqrt(D) folded in

    xsq = x * x
    if folded:
        # Block-diagonal ones (Df, Df): at every lane j the matmul yields the
        # sum of squares of the D_pad-wide segment containing j, i.e. the
        # per-original-row sumsq already broadcast across its lanes (MXU slot,
        # no XLU relayout).  2-pass hi/lo bf16 split keeps ~f32 accuracy at
        # DEFAULT precision (review: avoid the 6-pass HIGHEST matmul).
        seg = seg_ref[...]                                         # bf16 0/1
        hi = xsq.astype(jnp.bfloat16)
        lo = (xsq - hi.astype(jnp.float32)).astype(jnp.bfloat16)
        ss = (jnp.dot(hi, seg, preferred_element_type=jnp.float32)
              + jnp.dot(lo, seg, preferred_element_type=jnp.float32))
    else:
        ss = jnp.sum(xsq, axis=-1, keepdims=True)                  # (TS, 1)

    inv = jax.lax.rsqrt(jnp.maximum(ss, eps))     # == 1 / max(||x||, 1e-12)
    o_ref[...] = (x * inv * g).astype(o_ref.dtype)


def _sublane_multiple(dtype):
    # f32 -> 8, bf16/f16 -> 16, int8/fp8 -> 32 (sub-32-bit packs sublanes).
    bits = jnp.dtype(dtype).itemsize * 8
    return max(8, 256 // bits)


def _choose_row_tile(n_rows, row_bytes, target_bytes, sub):
    """Row tile: multiple of `sub`, near target_bytes, never larger than the
    sublane-rounded full extent (so no VMEM-busting full-plane fallback)."""
    full = -(-n_rows // sub) * sub
    ts = (int(target_bytes) // max(int(row_bytes), 1)) // sub * sub
    return max(sub, min(ts, full))


def multi_headed_rmsnorm(x, gamma, *, target_block_bytes=4 << 20):
    """x: (B, H, S, D); gamma: (H, 1, D). Returns (B, H, S, D)."""
    B, H, S, D = x.shape
    assert gamma.shape == (H, 1, D)
    scale = float(D) ** 0.5

    # ---- lane folding -------------------------------------------------------
    if D < 128:
        D_pad = 1 << max(D - 1, 0).bit_length()   # next power of 2, divides 128
        k = 128 // D_pad
    else:
        D_pad = D
        k = 1
        # TODO(synk): D > 128 and not a multiple of 128 leaves a lane-partial
        # tail (masked stores); could be fixed by also padding the lane dim.
    folded = k > 1
    Df = k * D_pad

    # ---- row tiling + padding so fold and tile both divide evenly ----------
    sub = _sublane_multiple(x.dtype)
    row_bytes = Df * jnp.dtype(x.dtype).itemsize
    Sf_min = -(-S // k)
    ts = _choose_row_tile(Sf_min, row_bytes, target_block_bytes, sub)
    n_s = -(-Sf_min // ts)
    Sf = n_s * ts
    S_pad = Sf * k

    if S_pad != S or D_pad != D:
        x = jnp.pad(x, ((0, 0), (0, 0), (0, S_pad - S), (0, D_pad - D)))
    # Pure metadata reshape (row-major): (B,H,S_pad,D_pad) -> (B*H, Sf, k*D_pad)
    x2 = x.reshape(B * H, Sf, Df)

    g = gamma
    if D_pad != D:
        g = jnp.pad(g, ((0, 0), (0, 0), (0, D_pad - D)))
    # g2[h, 0, j] == gamma[h, 0, j % D_pad]
    g2 = jnp.tile(g.reshape(H, D_pad), (1, k)).reshape(H, 1, Df)

    in_specs = [
        pl.BlockSpec((None, ts, Df), lambda r, s: (r, s, 0)),
        # gamma row for this head; only re-fetched when the slow axis changes.
        pl.BlockSpec((None, 1, Df), lambda r, s: (r % H, 0, 0)),
    ]
    operands = [x2, g2]

    seg_bytes = 0
    if folded:
        lane = jnp.arange(Df, dtype=jnp.int32)
        seg = (lane[:, None] // D_pad == lane[None, :] // D_pad)
        seg = seg.astype(jnp.bfloat16)            # 0/1 exact in bf16
        in_specs.append(pl.BlockSpec((Df, Df), lambda r, s: (0, 0)))
        operands.append(seg)
        seg_bytes = Df * Df * 2

    # ---- explicit VMEM budget: 2x in + 2x out (double-buffered) + f32 temps -
    blk_io = ts * Df * jnp.dtype(x.dtype).itemsize
    blk_f32 = ts * Df * 4
    vmem_limit = (4 * blk_io + 6 * blk_f32 + 2 * seg_bytes
                  + 2 * Df * jnp.dtype(gamma.dtype).itemsize + (2 << 20))
    vmem_limit = int(min(max(vmem_limit, 32 << 20), 60 << 20))  # v7x: 64 MiB/TC

    kernel = functools.partial(_mh_rmsnorm_kernel, scale=scale, eps=1e-24,
                               folded=folded)

    out2 = pl.pallas_call(
        kernel,
        out_shape=jax.ShapeDtypeStruct((B * H, Sf, Df), x.dtype),
        grid=(B * H, n_s),
        in_specs=in_specs,
        out_specs=pl.BlockSpec((None, ts, Df), lambda r, s: (r, s, 0)),
        compiler_params=pltpu.CompilerParams(
            dimension_semantics=("parallel", "parallel"),
            vmem_limit_bytes=vmem_limit,
        ),
    )(*operands)

    out = out2.reshape(B, H, S_pad, D_pad)
    if S_pad != S or D_pad != D:
        out = out[:, :, :S, :D]
    return out


def _reference(x, gamma):
    # pure-JAX reference of the PyTorch forward
    norm = jnp.sqrt(jnp.sum(x * x, axis=-1, keepdims=True))
    normalized = x / jnp.maximum(norm, 1e-12)
    scale = float(x.shape[-1]) ** 0.5
    return normalized * scale * gamma  # gamma (H,1,D) broadcasts over (B,H,S,D)


if __name__ == "__main__":
    key = jax.random.PRNGKey(0)
    B, H, S, D = 2, 4, 8, 32

    kx, kg = jax.random.split(key)
    x = jax.random.normal(kx, (B, H, S, D), dtype=jnp.float32)
    # nn.Parameter(torch.ones(heads, 1, dim)) perturbed slightly so the gamma
    # multiply is actually exercised.
    gamma = jnp.ones((H, 1, D), dtype=jnp.float32) \
        + 0.01 * jax.random.normal(kg, (H, 1, D), dtype=jnp.float32)

    out = multi_headed_rmsnorm(x, gamma)
    out = jax.block_until_ready(out)

    ref = _reference(x, gamma)
    assert out.shape == (B, H, S, D)
    assert jnp.allclose(out, ref, atol=1e-4, rtol=1e-4), \
        float(jnp.max(jnp.abs(out - ref)))

    print("KERNEL_OK")
</pallas_src>

<mosaic_0001>
module attributes {stable_mosaic.version = 11 : i64} {
  func.func @_mh_rmsnorm_kernel(%arg0: i32, %arg1: i32, %arg2: memref<1x8x128xf32, #tpu.memory_space<vmem>>, %arg3: memref<1x1x128xf32, #tpu.memory_space<vmem>>, %arg4: memref<128x128xbf16, #tpu.memory_space<vmem>>, %arg5: memref<1x8x128xf32, #tpu.memory_space<vmem>>) attributes {dimension_semantics = [#tpu.dimension_semantics<parallel>, #tpu.dimension_semantics<parallel>], iteration_bounds = array<i64: 8, 1>, scalar_prefetch = 0 : i64, scratch_operands = 0 : i64, tpu.core_type = #tpu.core_type<tc>, window_params = [{transform_indices = @transform_0, window_bounds = array<i64: 1, 8, 128>}, {transform_indices = @transform_1, window_bounds = array<i64: 1, 1, 128>}, {pipeline_mode = #tpu.pipeline_mode<synchronous>, transform_indices = @transform_2, window_bounds = array<i64: 128, 128>}, {transform_indices = @transform_3, window_bounds = array<i64: 1, 8, 128>}]} {
    %c0 = arith.constant 0 : index
    %c0_0 = arith.constant 0 : index
    %c0_1 = arith.constant 0 : index
    %0 = vector.load %arg2[%c0, %c0_0, %c0_1] : memref<1x8x128xf32, #tpu.memory_space<vmem>>, vector<1x8x128xf32>
    %1 = vector.shape_cast %0 : vector<1x8x128xf32> to vector<8x128xf32>
    %c0_2 = arith.constant 0 : index
    %c0_3 = arith.constant 0 : index
    %c0_4 = arith.constant 0 : index
    %2 = vector.load %arg3[%c0_2, %c0_3, %c0_4] : memref<1x1x128xf32, #tpu.memory_space<vmem>>, vector<1x1x128xf32>
    %3 = vector.shape_cast %2 : vector<1x1x128xf32> to vector<1x128xf32>
    %cst = arith.constant 5.65685415 : f32
    %4 = vector.broadcast %cst : f32 to vector<1x128xf32>
    %5 = arith.mulf %3, %4 : vector<1x128xf32>
    %6 = arith.mulf %1, %1 : vector<8x128xf32>
    %c0_5 = arith.constant 0 : index
    %c0_6 = arith.constant 0 : index
    %7 = vector.load %arg4[%c0_5, %c0_6] : memref<128x128xbf16, #tpu.memory_space<vmem>>, vector<128x128xbf16>
    %8 = arith.truncf %6 : vector<8x128xf32> to vector<8x128xbf16>
    %9 = arith.extf %8 : vector<8x128xbf16> to vector<8x128xf32>
    %10 = arith.subf %6, %9 : vector<8x128xf32>
    %11 = arith.truncf %10 : vector<8x128xf32> to vector<8x128xbf16>
    %cst_7 = arith.constant dense<0.000000e+00> : vector<8x128xf32>
    %12 = tpu.matmul %8, %7, %cst_7 {dimension_numbers = #tpu.dot_dimension_numbers<[1], [0], [0], [1], [0, 0, 1, 1], [], []>} : vector<8x128xbf16>, vector<128x128xbf16>, vector<8x128xf32> -> vector<8x128xf32>
    %cst_8 = arith.constant dense<0.000000e+00> : vector<8x128xf32>
    %13 = tpu.matmul %11, %7, %cst_8 {dimension_numbers = #tpu.dot_dimension_numbers<[1], [0], [0], [1], [0, 0, 1, 1], [], []>} : vector<8x128xbf16>, vector<128x128xbf16>, vector<8x128xf32> -> vector<8x128xf32>
    %14 = arith.addf %12, %13 : vector<8x128xf32>
    %cst_9 = arith.constant 1.000000e-24 : f32
    %15 = vector.broadcast %cst_9 : f32 to vector<8x128xf32>
    %16 = arith.maximumf %14, %15 : vector<8x128xf32>
    %17 = math.rsqrt %16 : vector<8x128xf32>
    %18 = arith.mulf %1, %17 : vector<8x128xf32>
    %19 = vector.broadcast %5 : vector<1x128xf32> to vector<8x128xf32>
    %20 = arith.mulf %18, %19 : vector<8x128xf32>
    %c0_10 = arith.constant 0 : index
    %c0_11 = arith.constant 0 : index
    %c0_12 = arith.constant 0 : index
    %21 = vector.load %arg5[%c0_10, %c0_11, %c0_12] : memref<1x8x128xf32, #tpu.memory_space<vmem>>, vector<1x8x128xf32>
    %22 = vector.shape_cast %21 : vector<1x8x128xf32> to vector<8x128xf32>
    %23 = vector.shape_cast %20 : vector<8x128xf32> to vector<1x8x128xf32>
    tpu.vector_store %arg5[%c0_10, %c0_11, %c0_12], %23 {strides = array<i32>} : memref<1x8x128xf32, #tpu.memory_space<vmem>>, vector<1x8x128xf32>,
    return
  }
  func.func @transform_0(%arg0: i32, %arg1: i32) -> (i32, i32, i32) {
    %c0_i32 = arith.constant 0 : i32
    %c0_i32_0 = arith.constant 0 : i32
    return %arg0, %arg1, %c0_i32 : i32, i32, i32
  }
  func.func @transform_1(%arg0: i32, %arg1: i32) -> (i32, i32, i32) {
    %c4_i32 = arith.constant 4 : i32
    %c0_i32 = arith.constant 0 : i32
    %0 = arith.cmpi eq, %c4_i32, %c0_i32 : i32
    %c1_i32 = arith.constant 1 : i32
    %1 = arith.select %0, %c1_i32, %c4_i32 : i32
    %2 = arith.remsi %arg0, %1 : i32
    %c0_i32_0 = arith.constant 0 : i32
    %3 = arith.cmpi ne, %2, %c0_i32_0 : i32
    %c0_i32_1 = arith.constant 0 : i32
    %4 = arith.cmpi slt, %2, %c0_i32_1 : i32
    %c0_i32_2 = arith.constant 0 : i32
    %5 = arith.cmpi slt, %1, %c0_i32_2 : i32
    %6 = arith.xori %4, %5 : i1
    %7 = arith.andi %6, %3 : i1
    %8 = arith.addi %2, %1 : i32
    %9 = arith.select %7, %8, %2 : i32
    %c0_i32_3 = arith.constant 0 : i32
    %c0_i32_4 = arith.constant 0 : i32
    %c0_i32_5 = arith.constant 0 : i32
    return %9, %c0_i32_3, %c0_i32_4 : i32, i32, i32
  }
  func.func @transform_2(%arg0: i32, %arg1: i32) -> (i32, i32) {
    %c0_i32 = arith.constant 0 : i32
    %c0_i32_0 = arith.constant 0 : i32
    %c0_i32_1 = arith.constant 0 : i32
    return %c0_i32, %c0_i32_0 : i32, i32
  }
  func.func @transform_3(%arg0: i32, %arg1: i32) -> (i32, i32, i32) {
    %c0_i32 = arith.constant 0 : i32
    %c0_i32_0 = arith.constant 0 : i32
    return %arg0, %arg1, %c0_i32 : i32, i32, i32
  }
}

</mosaic_0001>

<bundles_post_ra>
// kernel: tpu_custom_call.1
= control target key start
LH: loop header
LB: loop body
LE: loop exit
PB: predicated region body
PF: predicated region fallthrough
CT: control target
= control target key end

     0   :  { %s1337_s0 = inlined_call_operand.hbm [shape: f32[8,8,128], index: 0, kind: input, shape index: {}]   ;;  %s1338_s1 = inlined_call_operand.hbm [shape: f32[4,1,128], index: 1, kind: input, shape index: {}]   ;;  %s1339_s2 = inlined_call_operand.hbm [shape: bf16[128,128], index: 2, kind: input, shape index: {}]   ;;  %s1340_s3 = inlined_call_operand.hbm [shape: f32[8,8,128], index: 3, kind: output, shape index: {}]  }
   0x1   :  { %1347 = sst [smem:[#allocation13_spill]] %s1337_s0 }
   0x2   :  { %1348 = sst [smem:[#allocation14_spill]] %s1339_s2 }
   0x3   :  { %8 = vsyncpa [#allocation3], 0 }
   0x4   :  { %10 = vsyncpa [#allocation3 + $0x1], 0 }
   0x5   :  { %11 = vsyncpa [#allocation6], 0 }
   0x6   :  { %13 = vsyncpa [#allocation6 + $0x1], 0 }
   0x7   :  { %14 = vsyncpa [#allocation4], 0 }
   0x8   :  { %16 = vsyncpa [#allocation4 + $0x1], 0  ;;  %s1027_s12 = smov 0   ;;  %s1029_s13 = smov 0  }
   0x9   :  { %s1031_s14 = smov 0   ;;  %s1033_s15 = smov 0  }
   0xa   :  { %s1035_s16 = smov 0   ;;  %s1037_s17 = smov 0  }
   0xb   :  { %s1039_s18 = smov 0   ;;  %s1041_s19 = smov 0  }
   0xc   :  { %s1043_s20 = smov 0  }
   0xd LB: > { %s1073_s21 = sadd.s32 4294967295, %s997_s20   ;;  %p595_p0 = scmp.ge.s32.totalorder %s997_s20, 1  ;;  %s997_s20 = sphi %s1043_s20, %s22_s20   ;;  %s993_s19 = sphi %s1041_s19, %s1377_s19   ;;  %s989_s18 = sphi %s1039_s18, %s1376_s18   ;;  %s985_s17 = sphi %s1037_s17, %s1375_s17   ;;  %s981_s16 = sphi %s1035_s16, %s1374_s16   ;;  %s977_s15 = sphi %s1033_s15, %s1373_s15   ;;  %s973_s14 = sphi %s1031_s14, %s1372_s14   ;;  %s969_s13 = sphi %s1029_s13, %s1371_s13   ;;  %s965_s12 = sphi %s1027_s12, %s1370_s12  }
   0xe   : > { %p1341_p1 = scmp.eq.s32.totalorder %s1073_s21, 0  ;;  %p166_p2 = scmp.lt.s32.totalorder %s997_s20, 9 }
   0xf   : > { %s999_s23 = smov [#allocation7]   ;;  %s1351_s2 = sld [smem:[#allocation14_spill]] }
  0x10   : > { %p1078_p3 = pnand %p595_p0, %p166_p2  ;;  %s178_s24 = sshll.u32 %s999_s23, 4  ;;  %s179_s24 = int_to_ptr.vmem [resolvable:$true] %s178_s24 }
  0x12   : > { %s1349_s22 = scalar_select %p1078_p3, 1, 0 }
  0x13   : > { %p689_p4 = pneg %p1078_p3 }
  0x15   : > { %p1086_p5 = pnand %p689_p4, %p1341_p1  ;;  %s795_s28 = scalar_lea.hbm %s1351_s2, 1024 }
  0x16   : > { %p796_p6 = scmp.ne.s32.totalorder %s1351_s2, %s795_s28  ;;  %p802_p10 = scmp.lt.u32.totalorder %s795_s28, %s1351_s2 }
  0x17   : > { %p797_p7 = pneg %p1086_p5 }
  0x19   : > { %p798_p8 = pnand %p797_p7, %p796_p6 }
  0x1b   : > { %p799_p9 = pneg %p798_p8 }
  0x1d   : > { %p804_p11 = pnand %p802_p10, %p799_p9 }
  0x1f   : > { %807 = shalt.err (!%p804_p11)
}
  0x20   : > { %s808_s6 = scalar_lea.vmem %s179_s24, 1024  ;;  %p816_p2 = scmp.lt.s32.totalorder %s179_s24, %s179_s24 }
  0x21   : > { %p809_p12 = scmp.ne.s32.totalorder %s179_s24, %s808_s6  ;;  %p817_p4 = scmp.lt.s32.totalorder %s808_s6, %s808_s6 }
  0x23   : > { %p811_p13 = pnand %p809_p12, %p797_p7  ;;  %p818_p1 = por %p817_p4, %p816_p2 }
  0x25   : > { %p812_p0 = pneg %p811_p13 }
  0x27   : > { %p819_p3 = pnand %p818_p1, %p812_p0 }
  0x29   : > { %822 = shalt.err (!%p819_p3)
}
  0x2a   : > { %s1000_s7 = smov 64   ;;  %s1001_s8 = smov 4  }
  0x2b   : > { %692 = dma.hbm_to_vmem [thread:$0]  (!%p1086_p5), %s1351_s2, 1024, %s179_s24, [#allocation6], %s1000_s7, %s1000_s7, %s1001_s8  }
  0x2c   : > { %s588_s11 = sadd.s32 4294967294, %s997_s20   ;;  %s34_s23 = sadd.s32 1, %s993_s19 }
  0x2d   : > { %s43_s26 = sadd.s32 1, %s985_s17  ;;  %p36_p1 = scmp.ge.s32.totalorder %s34_s23, 8 }
  0x2e   : > { %p50_p3 = scmp.ne.s32.totalorder %s985_s17, %s981_s16  ;;  %p1344_p6 = scmp.eq.s32.totalorder %s997_s20, 0 }
  0x2f   : > { %p56_p7 = scmp.ne.s32.totalorder %s981_s16, %s977_s15  ;;  %s1379_s23 = smov (%p36_p1, %s34_s23), 0 }
  0x30   : > { %p1118_p8 = por %p1344_p6, %p50_p3  ;;  %p1353_p5 = scmp.eq.s32.totalorder %s1073_s21, 0 }
  0x31   : > { %s38_s27 = ssub.s32 %s993_s19, %s1379_s23  ;;  %p153_p10 = scmp.eq.s32.totalorder %s1073_s21, 7 }
  0x32   : > { %p1124_p9 = por %p1353_p5, %p56_p7  ;;  %p41_p11 = scmp.eq.s32.totalorder %s38_s27, 0 }
  0x33   : > { %p159_p12 = scmp.eq.s32.totalorder %s588_s11, 7  ;;  %p1131_p13 = por %p153_p10, %p50_p3 }
  0x34   : > { %p1343_p0 = scmp.lt.s32.totalorder %s997_s20, 8  ;;  %s192_s4 = sand.u32 1, %s985_s17  }
  0x35   : > { %s1355_s28 = scalar_select %p1131_p13, 1, 0 }
  0x36   : > { %s1137_s29 = scalar_select %p41_p11, %s985_s17, %s43_s26  }
  0x37   : > { %p1139_p2 = por %p159_p12, %p56_p7  ;;  %s598_s5 = sshll.u32 %s192_s4, 3 }
  0x38   : > { %s599_s6 = sshll.u32 %s993_s19, 7  ;;  %s1357_s0 = sld [smem:[#allocation13_spill]] }
  0x39   : > { %s1356_s30 = scalar_select %p1139_p2, 1, 0 }
  0x3a   : > { %s196_s10 = scalar_lea.vmem [#allocation2], %s598_s5  ;;  %p1156_p4 = pnand %p1343_p0, %p1118_p8 }
  0x3b   : > { %s204_s11 = sshll.u32 %s196_s10, 4  ;;  %s193_s27 = scalar_lea.sflag [#allocation3], %s192_s4  ;;  %s1150_s11 = int_to_ptr.vmem [resolvable:$true] %s204_s11 }
  0x3c   : > { %p825_p3 = pneg %p1156_p4 }
  0x3e   : > { %s1148_s9 = scalar_lea.hbm %s1357_s0, %s599_s6  ;;  %s828_s25 = scalar_lea.hbm %s1357_s0, 1024 }
  0x3f   : > { %s823_s7 = scalar_lea.hbm %s1148_s9, 128  ;;  %p829_p8 = scmp.lt.u32.totalorder %s1148_s9, %s1357_s0 }
  0x40   : > { %p824_p1 = scmp.ne.s32.totalorder %s1148_s9, %s823_s7  ;;  %p830_p10 = scmp.lt.u32.totalorder %s828_s25, %s823_s7 }
  0x41   : > { %p832_p12 = scmp.lt.u32.totalorder %s823_s7, %s1148_s9 }
  0x42   : > { %p826_p7 = pnand %p825_p3, %p824_p1  ;;  %p831_p11 = por %p830_p10, %p829_p8 }
  0x44   : > { %p827_p5 = pneg %p826_p7  ;;  %p833_p0 = por %p832_p12, %p831_p11 }
  0x46   : > { %p834_p6 = pnand %p833_p0, %p827_p5 }
  0x48   : > { %837 = shalt.err (!%p834_p6)
}
  0x49   : > { %s838_s4 = scalar_lea.vmem %s1150_s11, 128  ;;  %s1002_s5 = smov [#allocation2]  }
  0x4a   : > { %p839_p1 = scmp.ne.s32.totalorder %s1150_s11, %s838_s4  ;;  %s843_s6 = sshll.u32 %s1002_s5, 4  ;;  %s844_s6 = int_to_ptr.vmem [resolvable:$false] %s843_s6 }
  0x4b   : > { %s845_s8 = scalar_lea.vmem %s844_s6, 256  ;;  %p846_p13 = scmp.lt.s32.totalorder %s1150_s11, %s844_s6 }
  0x4c   : > { %p841_p7 = pnand %p839_p1, %p825_p3  ;;  %p847_p8 = scmp.lt.s32.totalorder %s845_s8, %s838_s4 }
  0x4e   : > { %p842_p2 = pneg %p841_p7  ;;  %p848_p10 = por %p847_p8, %p846_p13 }
  0x50   : > { %p849_p11 = pnand %p848_p10, %p842_p2 }
  0x52   : > { %852 = shalt.err (!%p849_p11)
}
  0x53   : > { %696 = dma.hbm_to_vmem [thread:$0]  (!%p1156_p4), %s1148_s9, 128, %s1150_s11, %s193_s27  }
  0x54   : > { %s67_s7 = ssub.s32 0, %s993_s19  ;;  %s79_s10 = ssub.s32 0, %s1379_s23 }
  0x55   : > { %s589_s25 = smin.u32 %s993_s19, %s67_s7  ;;  %s592_s26 = smin.u32 %s79_s10, %s1379_s23 }
  0x56   : > { %s69_s4 = sand.u32 3, %s589_s25   ;;  %s81_s5 = sand.u32 3, %s592_s26  }
  0x57   : > { %s93_s6 = sadd.s32 1, %s973_s14  ;;  %p591_p6 = scmp.lt.s32.totalorder %s69_s4, 0 }
  0x58   : > { %s76_s8 = sadd.s32 4, %s69_s4  ;;  %p594_p13 = scmp.lt.s32.totalorder %s81_s5, 0 }
  0x59   : > { %s1381_s8 = smov (!%p591_p6, %s76_s8), %s69_s4  ;;  %s88_s0 = sadd.s32 4, %s81_s5 }
  0x5a   : > { %p100_p0 = scmp.ne.s32.totalorder %s973_s14, %s969_s13  ;;  %p106_p2 = scmp.ne.s32.totalorder %s969_s13, %s965_s12 }
  0x5b   : > { %s1383_s0 = smov (!%p594_p13, %s88_s0), %s81_s5  ;;  %p1359_p4 = scmp.eq.s32.totalorder %s997_s20, 0 }
  0x5c   : > { %p1360_p5 = scmp.eq.s32.totalorder %s1073_s21, 0  ;;  %s90_s11 = ssub.s32 %s1381_s8, %s1383_s0 }
  0x5d   : > { %p102_p3 = por %p100_p0, %p1359_p4  ;;  %s211_s27 = sand.u32 1, %s997_s20  }
  0x5e   : > { %p1198_p12 = por %p106_p2, %p1360_p5  ;;  %p91_p1 = scmp.eq.s32.totalorder %s90_s11, 0 }
  0x5f   : > { %s213_s7 = sand.u32 1, %s973_s14   ;;  %s603_s25 = sshll.u32 %s1381_s8, 4 }
  0x60   : > { %s1361_s9 = scalar_select %p1198_p12, 1, 0 }
  0x61   : > { %s1205_s10 = scalar_select %p91_p1, %s973_s14, %s93_s6  }
  0x62   : > { %s1210_s2 = scalar_lea.hbm %s1338_s1, %s603_s25  ;;  %s214_s12 = scalar_lea.vmem [#allocation5], %s213_s7 }
  0x63   : > { %s233_s5 = sshll.u32 %s214_s12, 4  ;;  %p1362_p7 = scmp.lt.s32.totalorder %s997_s20, 8  ;;  %s1218_s5 = int_to_ptr.vmem [resolvable:$true] %s233_s5 }
  0x64   : > { %s212_s6 = scalar_lea.sflag [#allocation6], %s211_s27  ;;  %s853_s8 = scalar_lea.hbm %s1210_s2, 16 }
  0x65   : > { %p1214_p8 = pnand %p1362_p7, %p102_p3  ;;  %p854_p10 = scmp.ne.s32.totalorder %s1210_s2, %s853_s8 }
  0x66   : > { %s858_s25 = scalar_lea.hbm %s1338_s1, 64  ;;  %p859_p0 = scmp.lt.u32.totalorder %s1210_s2, %s1338_s1 }
  0x67   : > { %p855_p11 = pneg %p1214_p8  ;;  %p860_p2 = scmp.lt.u32.totalorder %s858_s25, %s853_s8 }
  0x68   : > { %p862_p3 = scmp.lt.u32.totalorder %s853_s8, %s1210_s2 }
  0x69   : > { %p856_p6 = pnand %p855_p11, %p854_p10  ;;  %p861_p4 = por %p860_p2, %p859_p0 }
  0x6b   : > { %p857_p13 = pneg %p856_p6  ;;  %p863_p5 = por %p862_p3, %p861_p4 }
  0x6d   : > { %p864_p1 = pnand %p863_p5, %p857_p13 }
  0x6f   : > { %867 = shalt.err (!%p864_p1)
}
  0x70   : > { %s868_s27 = scalar_lea.vmem %s1218_s5, 16  ;;  %s1003_s12 = smov [#allocation5]  }
  0x71   : > { %p869_p7 = scmp.ne.s32.totalorder %s1218_s5, %s868_s27  ;;  %s873_s11 = sshll.u32 %s1003_s12, 4  ;;  %s874_s11 = int_to_ptr.vmem [resolvable:$false] %s873_s11 }
  0x72   : > { %s875_s7 = scalar_lea.vmem %s874_s11, 32  ;;  %p876_p12 = scmp.lt.s32.totalorder %s1218_s5, %s874_s11 }
  0x73   : > { %p871_p10 = pnand %p869_p7, %p855_p11  ;;  %p877_p0 = scmp.lt.s32.totalorder %s875_s7, %s868_s27 }
  0x75   : > { %p872_p6 = pneg %p871_p10  ;;  %p878_p2 = por %p877_p0, %p876_p12 }
  0x77   : > { %p879_p4 = pnand %p878_p2, %p872_p6 }
  0x79   : > { %882 = shalt.err (!%p879_p4)
}
  0x7a   : > { %699 = dma.hbm_to_vmem [thread:$0]  (!%p1214_p8), %s1210_s2, 16, %s1218_s5, %s212_s6  }
  0x7b   : > { %p1364_p13 = scmp.ne.s32.totalorder %s1349_s22, 0 }
  0x7c   : > { %s1248_s8 = sand.u32 (!%p1364_p13), 1, %s981_s16  }
  0x7d   : > { %242 = sbr.rel (%p1364_p13) target bundleno = 420 (0x1a4), region = 32  ;;  %s605_s25 = sshll.u32 (!%p1364_p13), %s1248_s8, 3 }
  0x7e   : > { %s245_s4 = scalar_lea.sflag (!%p1364_p13), [#allocation3], %s1248_s8  ;;  %s1254_s26 = scalar_lea.vmem (!%p1364_p13), [#allocation2], %s605_s25 }
  0x84   : > { %948 = dma.done.wait (%p1124_p9), %s245_s4, 128  }
  0x85   : > { %950 = vsyncadd (%p1124_p9), %s245_s4, 4294967168  ;;  %s253_s2 = sand.u32 1, %s1073_s21   ;;  %s255_s22 = sand.u32 1, %s969_s13  }
  0x86   : > { %s254_s5 = scalar_lea.sflag [#allocation6], %s253_s2  ;;  %s1262_s0 = scalar_lea.vmem [#allocation5], %s255_s22 }
  0x87   : > { %p1365_p12 = scmp.ne.s32.totalorder %s1361_s9, 0 }
  0x89   : > { %952 = dma.done.wait (%p1365_p12), %s254_s5, 16  }
  0x8a   : > { %954 = vsyncadd (%p1365_p12), %s254_s5, 4294967280  ;;  %p1366_p8 = scmp.eq.s32.totalorder %s1073_s21, 0 }
  0x8c   : > { %956 = dma.done.wait (%p1366_p8), [#allocation6], 1024   ;;  %p1367_p11 = pmov %p1366_p8 }
  0x8d   : > { %v1004_v0 = vmov 0.0   ;;  %vm1005_vm0 = vmmov 0   ;;  %v785_v1 = vld [vmem:[#allocation7] sm:$0xff]   ;;  %v786_v2 = vld [vmem:[#allocation7 + $0x8] sm:$0xff]   ;;  %v787_v3 = vld [vmem:[#allocation7 + $0x10] sm:$0xff]   ;;  %v456_v22 = vlaneseq  ;;  %s617_s21 = sshll.u32 %s989_s18, 7 }
  0x8e   : > { %958 = vsyncadd (%p1367_p11), [#allocation6], 4294966272  ;;  %638 = vmatprep.subr.bf16.mxu1 %v1004_v0  ;;  %658 = vmatprep.subr.bf16.mxu0 %v1004_v0  ;;  %v788_v4 = vld [vmem:[#allocation7 + $0x18] sm:$0xff]   ;;  %v789_v7 = vld [vmem:[#allocation7 + $0x20] sm:$0xff]   ;;  %s286_s24 = scalar_lea.vmem [#allocation8], %s605_s25  ;;  %s1280_s12 = scalar_lea.hbm %s1340_s3, %s617_s21 }
  0x8f   : > { %654 = vmatprep.mubr.msk.bf16.mxu1 %vm1005_vm0, %v1004_v0  ;;  %674 = vmatprep.mubr.msk.bf16.mxu0 %vm1005_vm0, %v1004_v0  ;;  %v300_v5 = vld [vmem:[%s1254_s26] sm:$0xff]  ;;  %v457_v26 = vshrl.u32 %v456_v22, 7  ;;  %s478_s9 = sshll.u32 %s286_s24, 4  ;;  %s464_s11 = scalar_lea.sflag [#allocation4], %s1248_s8  ;;  %s1282_s9 = int_to_ptr.vmem [resolvable:$true] %s478_s9 }
  0x90   : > { %639 = vmatpush3.bf16.msra.mxu1 %v785_v1  ;;  %659 = vmatpush3.bf16.msra.mxu0 %v785_v1  ;;  %v303_v6 = vmul.f32 %v300_v5, %v300_v5  ;;  %v790_v9 = vld [vmem:[#allocation7 + $0x28] sm:$0xff]   ;;  %v791_v11 = vld [vmem:[#allocation7 + $0x30] sm:$0xff]   ;;  %v792_v13 = vld [vmem:[#allocation7 + $0x38] sm:$0xff]   ;;  %s883_s7 = scalar_lea.vmem %s1282_s9, 128  ;;  %p1368_p3 = scmp.ne.s32.totalorder %s1355_s28, 0 }
  0x91   : > { %640 = vmatprep.subr.bf16.mxu1 %v1004_v0  ;;  %660 = vmatprep.subr.bf16.mxu0 %v1004_v0  ;;  %v301_v27 = vld [vmem:[%s1262_s0] sm:$0x1]  ;;  %v458_v29 = vsub.s32 0, %v457_v26  ;;  %p884_p9 = scmp.ne.s32.totalorder %s1282_s9, %s883_s7  ;;  %s1006_s18 = smov [#allocation8]  }
  0x92   : > { %v320_v8 = vpack.c.bf16 %v303_v6, %v303_v6  ;;  %v302_v28 = vmul.f32 5.656854, %v301_v27  ;;  %s887_s25 = sshll.u32 %s1006_s18, 4  ;;  %s888_s25 = int_to_ptr.vmem [resolvable:$false] %s887_s25 }
  0x93   : > { %p885_p5 = pnand %p884_p9, %p1368_p3  ;;  %s889_s4 = scalar_lea.vmem %s888_s25, 256 }
  0x94   : > { %641 = vmatpush3.bf16.msra.mxu1 %v786_v2  ;;  %661 = vmatpush3.bf16.msra.mxu0 %v786_v2  ;;  %v321_v10 = vunpack.c.l.bf16 %v320_v8  ;;  %v459_v30 = vrot.slane %v302_v28, %v458_v29  ;;  %p890_p7 = scmp.lt.s32.totalorder %s1282_s9, %s888_s25  ;;  %p891_p10 = scmp.lt.s32.totalorder %s889_s4, %s883_s7 }
  0x95   : > { %642 = vmatprep.subr.bf16.mxu1 %v1004_v0  ;;  %662 = vmatprep.subr.bf16.mxu0 %v1004_v0  ;;  %p886_p1 = pneg %p885_p5 }
  0x96   : > { %v322_v12 = vsub.f32 %v303_v6, %v321_v10  ;;  %p892_p6 = por %p891_p10, %p890_p7 }
  0x98   : > { %643 = vmatpush3.bf16.msra.mxu1 %v787_v3  ;;  %663 = vmatpush3.bf16.msra.mxu0 %v787_v3  ;;  %v323_v14 = vpack.c.bf16 %v322_v12, %v322_v12  ;;  %p893_p0 = pnand %p892_p6, %p886_p1 }
  0x99   : > { %644 = vmatprep.subr.bf16.mxu1 %v1004_v0  ;;  %664 = vmatprep.subr.bf16.mxu0 %v1004_v0 }
  0x9c   : > { %645 = vmatpush3.bf16.msra.mxu1 %v788_v4  ;;  %665 = vmatpush3.bf16.msra.mxu0 %v788_v4 }
  0x9d   : > { %646 = vmatprep.subr.bf16.mxu1 %v1004_v0  ;;  %666 = vmatprep.subr.bf16.mxu0 %v1004_v0 }
  0xa0   : > { %647 = vmatpush3.bf16.msra.mxu1 %v789_v7  ;;  %667 = vmatpush3.bf16.msra.mxu0 %v789_v7 }
  0xa1   : > { %648 = vmatprep.subr.bf16.mxu1 %v1004_v0  ;;  %668 = vmatprep.subr.bf16.mxu0 %v1004_v0 }
  0xa4   : > { %649 = vmatpush3.bf16.msra.mxu1 %v790_v9  ;;  %669 = vmatpush3.bf16.msra.mxu0 %v790_v9 }
  0xa5   : > { %650 = vmatprep.subr.bf16.mxu1 %v1004_v0  ;;  %670 = vmatprep.subr.bf16.mxu0 %v1004_v0 }
  0xa8   : > { %651 = vmatpush3.bf16.msra.mxu1 %v791_v11  ;;  %671 = vmatpush3.bf16.msra.mxu0 %v791_v11 }
  0xa9   : > { %652 = vmatprep.subr.bf16.mxu1 %v1004_v0  ;;  %672 = vmatprep.subr.bf16.mxu0 %v1004_v0 }
  0xac   : > { %653 = vmatpush3.bf16.msra.mxu1 %v792_v13  ;;  %673 = vmatpush3.bf16.msra.mxu0 %v792_v13 }
  0xaf   : > { %655 = vmatmul.mubr.bf16.vlgmr.msra.gmra.mrb[0].mxu1 %v323_v14  ;;  %675 = vmatmul.mubr.bf16.vlgmr.msra.gmra.mrb[0].mxu0 %v320_v8 }
 0x182   : > { %v406_v15 = vpop.f32.mrb[0].mxu1  ;;  %v446_v16 = vpop.f32.mrb[0].mxu0 }
 0x183   : > { %v447_v17 = vadd.f32 %v446_v16, %v406_v15  ;;  %v656_v18 = vpop.f32.mrb[1].mxu1  ;;  %v676_v19 = vpop.f32.mrb[1].mxu0 }
 0x184   : > { %v409_v20 = vpop.f32.mrb[2].mxu1  ;;  %v449_v21 = vpop.f32.mrb[2].mxu0 }
 0x185   : > { %v452_v23 = vmax.f32 %v447_v17, 1e-24  ;;  %v657_v24 = vpop.f32.mrb[3].mxu1  ;;  %v677_v25 = vpop.f32.mrb[3].mxu0 }
 0x187   : > { %793 = vrsqrt.f32 %v452_v23 }
 0x191   : > { %v794_v31 = vpop.eup %793 }
 0x192   : > { %v454_v32 = vmul.f32 %v794_v31, %v300_v5 }
 0x194   : > { %v461_v33 = vmul.f32 %v459_v30, %v454_v32 }
 0x196   : > { %462 = vst [vmem:[%s286_s24] sm:$0xff] %v461_v33 }
 0x197   : > { %896 = shalt.err (!%p893_p0)
}
 0x198   : > { %s897_s8 = scalar_lea.hbm %s1280_s12, 128  ;;  %s901_s22 = scalar_lea.hbm %s1340_s3, 1024 }
 0x199   : > { %p898_p2 = scmp.ne.s32.totalorder %s1280_s12, %s897_s8  ;;  %p902_p12 = scmp.lt.u32.totalorder %s1280_s12, %s1340_s3 }
 0x19a   : > { %p903_p8 = scmp.lt.u32.totalorder %s901_s22, %s897_s8  ;;  %p905_p9 = scmp.lt.u32.totalorder %s897_s8, %s1280_s12 }
 0x19b   : > { %p899_p4 = pnand %p898_p2, %p1368_p3 }
 0x19c   : > { %p904_p11 = por %p903_p8, %p902_p12 }
 0x19d   : > { %p900_p13 = pneg %p899_p4 }
 0x19e   : > { %p906_p5 = por %p905_p9, %p904_p11 }
 0x1a0   : > { %p907_p1 = pnand %p906_p5, %p900_p13 }
 0x1a2   : > { %910 = shalt.err (!%p907_p1)
}
 0x1a3   : > { %687 = dma.vmem_to_hbm [thread:$0]  (%p1368_p3), %s1282_s9, 128, %s1280_s12, %s464_s11  }
 0x1a4 PF: > { %p707_p7 = scmp.ge.s32.totalorder %s997_s20, 2  ;;  %s490_s21 = sand.u32 1, %s977_s15  }
 0x1a5   : > { %p1369_p10 = scmp.ne.s32.totalorder %s1356_s30, 0  ;;  %s491_s24 = scalar_lea.sflag [#allocation4], %s490_s21 }
 0x1a7   : > { %p701_p6 = pnand %p707_p7, %p1369_p10 }
 0x1a9   : > { %960 = dma.done.wait (!%p701_p6), %s491_s24, 128  }
 0x1aa   : > { %962 = vsyncadd (!%p701_p6), %s491_s24, 4294967168  ;;  %s22_s20 = sadd.s32 1, %s997_s20   ;;  %s1370_s12 = smov %s969_s13 }
 0x1ab   : > { %p19_p0 = scmp.ge.s32.totalorder %s22_s20, 10   ;;  %s1371_s13 = smov %s973_s14 }
 0x1ac   : > { %s1372_s14 = smov %s1205_s10  ;;  %s1373_s15 = smov %s981_s16 }
 0x1ad   : > { %s1374_s16 = smov %s985_s17  ;;  %s1375_s17 = smov %s1137_s29 }
 0x1ae   : > { %s1376_s18 = smov %s993_s19  ;;  %s1377_s19 = smov %s1379_s23 }
 0x1af   :  { %21 = sbr.rel (!%p19_p0) target bundleno = 13 (0xd), region = 94 }
 0x1b6   :  { %496 = vsyncpa [#allocation3], 1 }
 0x1b7   :  { %498 = vsyncpa [#allocation3 + $0x1], 1 }
 0x1b8   :  { %499 = vsyncpa [#allocation6], 1 }
 0x1b9   :  { %501 = vsyncpa [#allocation6 + $0x1], 1 }
 0x1ba   :  { %502 = vsyncpa [#allocation4], 1 }
 0x1bb   :  { %504 = vsyncpa [#allocation4 + $0x1], 1 }

</bundles_post_ra>
